<compile_context>
chip_gen: v6e
topology: v6e:2x2x1
jax: 0.10.0
libtpu: 0.0.40
codegen_flags: <defaults>
</compile_context>

<pallas_src>
import jax
import jax.numpy as jnp
from jax.experimental import pallas as pl
from jax.experimental.pallas import tpu as pltpu


# ----------------------------------------------------------------------------
# Primary path: zero-copy passthrough (no HBM traffic at all).
# ----------------------------------------------------------------------------
def _passthrough_kernel(x_ref, o_ref):
    del x_ref
    # The output aliases the input HBM buffer, so the data is already in place.
    # touch() adds a fake read+write dependency: it keeps the aliased output
    # live/ordered without issuing any DMA or vector ops.
    pltpu.touch(o_ref)


def _identity_passthrough(x: jax.Array) -> jax.Array:
    return pl.pallas_call(
        _passthrough_kernel,
        out_shape=jax.ShapeDtypeStruct(x.shape, x.dtype),
        in_specs=[pl.BlockSpec(memory_space=pl.ANY)],
        out_specs=pl.BlockSpec(memory_space=pl.ANY),
        input_output_aliases={0: 0},
        compiler_params=pltpu.CompilerParams(has_side_effects=True),
    )(x)


# ----------------------------------------------------------------------------
# Fallback path: lane-dense tiled copy (only if the passthrough can't lower).
# ----------------------------------------------------------------------------
_BLOCK_BYTES_BUDGET = 4 * 1024 * 1024  # PADDED VMEM bytes per block
_LANE = 128
_SUBLANE = 32  # multiple-of-32 rows satisfies sublane packing for f32/bf16/int8


def _copy_kernel(x_ref, o_ref):
    # Pure pass-through: one VMEM load + one VMEM store per block.
    o_ref[...] = x_ref[...]


def _identity_copy(x: jax.Array) -> jax.Array:
    if x.size == 0:
        return x
    # Collapse trailing dims so the block's last dim is the full, contiguous
    # row: lane-dense unmasked stores, and the VMEM-padding estimate is exact.
    x2 = x.reshape(1, -1) if x.ndim < 2 else x.reshape(x.shape[0], -1)
    rows_total, cols = x2.shape
    item = x2.dtype.itemsize
    # Padded bytes of one row once it lands in VMEM (last dim pads to 128 lanes).
    padded_row_bytes = pl.cdiv(cols, _LANE) * _LANE * item
    # TODO(synk): if a single padded row ever exceeds the budget, also tile the
    # last dim in multiples of 128; not needed for this module's shapes.
    rows = _BLOCK_BYTES_BUDGET // max(1, padded_row_bytes)
    rows = max(_SUBLANE, (rows // _SUBLANE) * _SUBLANE)
    if rows >= rows_total:
        rows = rows_total  # single block along the leading dim (full extent)
    y2 = pl.pallas_call(
        _copy_kernel,
        out_shape=jax.ShapeDtypeStruct((rows_total, cols), x2.dtype),
        grid=(pl.cdiv(rows_total, rows),),
        in_specs=[pl.BlockSpec((rows, cols), lambda i: (i, 0))],
        out_specs=pl.BlockSpec((rows, cols), lambda i: (i, 0)),
        input_output_aliases={0: 0},
        compiler_params=pltpu.CompilerParams(
            # Single grid axis is fully parallel -> shards across v7x's 2 TCs.
            dimension_semantics=("parallel",),
            # Headroom for 2 refs x 2 buffers x 4 MiB + internal scratch;
            # needed on v5e (16 MiB scoped default), safe on v6e/v7x.
            vmem_limit_bytes=48 << 20,
        ),
        cost_estimate=pl.CostEstimate(
            flops=0, transcendentals=0, bytes_accessed=2 * x.size * item),
    )(x2)
    return y2.reshape(x.shape)


def empty_module_forward(x: jax.Array) -> jax.Array:
    """Pallas equivalent of EmptyModule.forward: returns x unchanged."""
    try:
        return _identity_passthrough(x)
    except Exception:
        # Safety net: a correct, roofline-tiled identity copy.
        return _identity_copy(x)


if __name__ == "__main__":
    key = jax.random.PRNGKey(0)
    shape = (2, 4, 16, 16)  # NCHW, as the PyTorch module would see
    x = jax.random.normal(key, shape, dtype=jnp.float32)

    y = empty_module_forward(x)
    jax.block_until_ready(y)

    # Regenerate expected values from the same key: with input/output aliasing
    # the result may literally be the input buffer, so compare against fresh
    # data rather than the (possibly donated) input.
    expected = jax.random.normal(key, shape, dtype=jnp.float32)

    assert y.shape == shape, (y.shape, shape)
    assert y.dtype == jnp.float32, y.dtype
    assert bool(jnp.array_equal(y, expected)), "identity kernel output mismatch"

    print("KERNEL_OK")
</pallas_src>

<mosaic_0001>
module attributes {stable_mosaic.version = 11 : i64} {
  func.func @_passthrough_kernel(%arg0: memref<2x4x16x16xf32, #tpu.memory_space<any>>, %arg1: memref<2x4x16x16xf32, #tpu.memory_space<any>>) attributes {dimension_semantics = [], scalar_prefetch = 0 : i64, scratch_operands = 0 : i64, tpu.core_type = #tpu.core_type<tc>} {
    return
  }
}

module attributes {stable_mosaic.version = 11 : i64} {
  func.func @_copy_kernel(%arg0: i32, %arg1: memref<2x1024xf32, #tpu.memory_space<vmem>>, %arg2: memref<2x1024xf32, #tpu.memory_space<vmem>>) attributes {dimension_semantics = [#tpu.dimension_semantics<parallel>], iteration_bounds = array<i64: 1>, scalar_prefetch = 0 : i64, scratch_operands = 0 : i64, tpu.core_type = #tpu.core_type<tc>, window_params = [{transform_indices = @transform_0, window_bounds = array<i64: 2, 1024>}, {transform_indices = @transform_1, window_bounds = array<i64: 2, 1024>}]} {
    %c0 = arith.constant 0 : index
    %c0_0 = arith.constant 0 : index
    %0 = vector.load %arg1[%c0, %c0_0] : memref<2x1024xf32, #tpu.memory_space<vmem>>, vector<2x1024xf32>
    %c0_1 = arith.constant 0 : index
    %c0_2 = arith.constant 0 : index
    %1 = vector.load %arg2[%c0_1, %c0_2] : memref<2x1024xf32, #tpu.memory_space<vmem>>, vector<2x1024xf32>
    tpu.vector_store %arg2[%c0_1, %c0_2], %0 {strides = array<i32>} : memref<2x1024xf32, #tpu.memory_space<vmem>>, vector<2x1024xf32>,
    return
  }
  func.func @transform_0(%arg0: i32) -> (i32, i32) {
    %c0_i32 = arith.constant 0 : i32
    %c0_i32_0 = arith.constant 0 : i32
    return %arg0, %c0_i32 : i32, i32
  }
  func.func @transform_1(%arg0: i32) -> (i32, i32) {
    %c0_i32 = arith.constant 0 : i32
    %c0_i32_0 = arith.constant 0 : i32
    return %arg0, %c0_i32 : i32, i32
  }
}

</mosaic_0001>

<bundles_post_ra>
// kernel: tpu_custom_call.1
= control target key start
LH: loop header
LB: loop body
LE: loop exit
PB: predicated region body
PF: predicated region fallthrough
CT: control target
= control target key end

     0   :  { %s16_s0 = inlined_call_operand.hbm [shape: f32[2,4,16,16], index: 0, kind: input, shape index: {}, may-alias: {0,1}]   ;;  %s17_s1 = inlined_call_operand.hbm [shape: f32[2,4,16,16], index: 1, kind: output, shape index: {}, may-alias: {0,1}]  }

// kernel: tpu_custom_call.1
= control target key start
LH: loop header
LB: loop body
LE: loop exit
PB: predicated region body
PF: predicated region fallthrough
CT: control target
= control target key end

     0   :  { %6 = vsyncpa [#allocation3], 0  ;;  %s104_s0 = inlined_call_operand.hbm [shape: f32[2,1024], index: 0, kind: input, shape index: {}, may-alias: {0,1}]   ;;  %s105_s1 = inlined_call_operand.hbm [shape: f32[2,1024], index: 1, kind: output, shape index: {}, may-alias: {0,1}]  }
   0x1   :  { %7 = vsyncpa [#allocation4], 0  ;;  %s86_s6 = smov [#allocation2]  }
   0x2   :  { %s14_s7 = sshll.u32 %s86_s6, 4  ;;  %s15_s7 = int_to_ptr.vmem [resolvable:$true] %s14_s7 }
   0x3   :  { %s50_s8 = scalar_lea.vmem %s15_s7, 256  ;;  %p55_p1 = scmp.lt.s32.totalorder %s15_s7, %s15_s7 }
   0x4   :  { %p51_p0 = scmp.ne.s32.totalorder %s15_s7, %s50_s8  ;;  %p56_p2 = scmp.lt.s32.totalorder %s50_s8, %s50_s8 }
   0x6   :  { %p57_p3 = por %p56_p2, %p55_p1 }
   0x8   :  { %p58_p4 = pnand %p57_p3, %p51_p0 }
   0xa   :  { %61 = shalt.err (!%p58_p4)
}
   0xb   :  { %17 = dma.hbm_to_vmem [thread:$0]  %s104_s0, 256, %s15_s7, [#allocation3]  }
   0xc   :  { %82 = dma.done.wait [#allocation3], 256  }
   0xd   :  { %83 = vsyncadd [#allocation3], 4294967040  ;;  %s87_s11 = smov [#allocation5]   ;;  %v21_v0 = vld [vmem:[#allocation2] sm:$0xff]  ;;  %v22_v1 = vld [vmem:[#allocation2 + $0x8] sm:$0xff] }
   0xe   :  { %s31_s12 = sshll.u32 %s87_s11, 4  ;;  %23 = vst [vmem:[#allocation5] sm:$0xff] %v21_v0  ;;  %24 = vst [vmem:[#allocation5 + $0x8] sm:$0xff] %v22_v1  ;;  %s32_s12 = int_to_ptr.vmem [resolvable:$true] %s31_s12 }
   0xf   :  { %s62_s13 = scalar_lea.vmem %s32_s12, 256  ;;  %p67_p6 = scmp.lt.s32.totalorder %s32_s12, %s32_s12 }
  0x10   :  { %p63_p5 = scmp.ne.s32.totalorder %s32_s12, %s62_s13  ;;  %p68_p7 = scmp.lt.s32.totalorder %s62_s13, %s62_s13 }
  0x12   :  { %p69_p8 = por %p68_p7, %p67_p6 }
  0x14   :  { %p70_p9 = pnand %p69_p8, %p63_p5 }
  0x16   :  { %73 = shalt.err (!%p70_p9)
}
  0x17   :  { %34 = dma.vmem_to_hbm [thread:$0]  %s32_s12, 256, %s105_s1, [#allocation4]  }
  0x18   :  { %84 = dma.done.wait [#allocation4], 256  }
  0x19   :  { %85 = vsyncadd [#allocation4], 4294967040 }
  0x1a   :  { %38 = vsyncpa [#allocation3], 1 }
  0x1b   :  { %39 = vsyncpa [#allocation4], 1 }

</bundles_post_ra>
